<compile_context>
chip_gen: v6e
topology: v6e:2x2x1
jax: 0.10.0
libtpu: 0.0.40
codegen_flags: <defaults>
</compile_context>

<pallas_src>
import jax
import jax.numpy as jnp
from jax.experimental import pallas as pl
from jax.experimental.pallas import tpu as pltpu


def _round_up(x: int, m: int) -> int:
    return ((x + m - 1) // m) * m


def _vmem_capacity_bytes() -> int:
    """Per-core VMEM capacity; conservative fallback (v7x = 64 MiB) if the query fails."""
    try:
        info = pltpu.get_tpu_info()
        cap = getattr(info, "vmem_capacity_bytes", None)
        if cap:
            return int(cap)
    except Exception:
        pass
    return 64 * 1024 * 1024


def _choose_tile(padded_dim: int, align: int, preferred: int) -> int:
    """Largest tile <= preferred (multiple of align) that divides padded_dim when possible.

    `preferred` must itself be a multiple of `align`. Falls back to `preferred`
    (accepting up to preferred-align of padding) rather than degrading to tiny tiles.
    """
    if padded_dim <= preferred:
        return padded_dim
    lo = max(align, preferred // 2)
    for cand in range(preferred, lo - 1, -align):
        if padded_dim % cand == 0:
            return cand
    return preferred


def _matmul_kernel_accout(x_ref, w_ref, o_ref):
    """f32 output: accumulate straight into the resident output block (no scratch)."""
    @pl.when(pl.program_id(2) == 0)
    def _():
        o_ref[...] = jnp.zeros_like(o_ref)

    o_ref[...] += jnp.dot(x_ref[...], w_ref[...], preferred_element_type=jnp.float32)


def _matmul_kernel_scratch(x_ref, w_ref, o_ref, acc_ref):
    """Non-f32 output: f32 VMEM accumulator, cast/store on the last K step."""
    k = pl.program_id(2)

    @pl.when(k == 0)
    def _():
        acc_ref[...] = jnp.zeros_like(acc_ref)

    acc_ref[...] += jnp.dot(x_ref[...], w_ref[...], preferred_element_type=jnp.float32)

    @pl.when(k == pl.num_programs(2) - 1)
    def _():
        o_ref[...] = acc_ref[...].astype(o_ref.dtype)


def pallas_matmul(x: jax.Array, weight: jax.Array, *, tm: int = 512, tn: int = 512,
                  tk: int = 1024, prefer_bf16_inputs: bool = True) -> jax.Array:
    """x: (M, K), weight: (K, N) -> (M, N). torch.matmul semantics for 2-D float inputs."""
    M, K = x.shape
    K2, N = weight.shape
    assert K == K2, f"inner dims must match, got {K} vs {K2}"
    assert jnp.issubdtype(x.dtype, jnp.floating) and jnp.issubdtype(weight.dtype, jnp.floating), (
        "pallas_matmul supports floating dtypes only (TPU MXU / this kernel)")

    out_dtype = jnp.result_type(x.dtype, weight.dtype)

    # MXU operand dtype. Default dot precision on TPU already runs f32 operands as bf16
    # MXU passes, so casting f32 -> bf16 halves HBM/VMEM traffic with no further accuracy
    # loss vs. the JAX default. Set prefer_bf16_inputs=False to keep f32 operands.
    if prefer_bf16_inputs and x.dtype == jnp.float32 and weight.dtype == jnp.float32:
        in_dtype = jnp.bfloat16
    else:
        in_dtype = out_dtype
    in_itemsize = jnp.dtype(in_dtype).itemsize
    out_itemsize = jnp.dtype(out_dtype).itemsize

    # Layout-aligned dims (minimum padding): sublane (8) on M, lane (128) on K/N.
    Ma, Ka, Na = _round_up(M, 8), _round_up(K, 128), _round_up(N, 128)

    # Tile selection: prefer big, 256-aligned-or-larger tiles; shrink only to the aligned
    # problem size (keeps padding at alignment level, not tile level).
    tm = _choose_tile(Ma, 8, tm)
    tn = _choose_tile(Na, 128, tn)
    tk = _choose_tile(Ka, 128, tk)

    # Megacore / v7x: make sure at least one parallel (M/N) axis has >= 2 tiles so both
    # TensorCores get work on small/medium problems.
    if (Ma // tm) * (Na // tn) < 2:
        if Na >= 256 and (Na // 2) % 128 == 0:
            tn = Na // 2
        elif Ma >= 16 and (Ma // 2) % 8 == 0:
            tm = Ma // 2

    use_scratch = out_dtype != jnp.float32

    # VMEM budget gate (v7x: 64 MiB per core; v5e/v6e: 128 MiB). Double-buffered x/w/out
    # tiles plus the (optional) f32 accumulator must fit the scoped limit we request.
    vmem_cap = _vmem_capacity_bytes()
    budget = max(32 * 1024 * 1024, int(vmem_cap * 0.7))

    def working_set(tm_, tn_, tk_):
        ws = 2 * (tm_ * tk_ + tk_ * tn_) * in_itemsize          # double-buffered x, w
        ws += 2 * tm_ * tn_ * out_itemsize                       # double-buffered out
        if use_scratch:
            ws += tm_ * tn_ * 4                                  # f32 accumulator
        return ws

    while working_set(tm, tn, tk) > budget and max(tm, tn, tk) > 128:
        if tk >= tn and tk >= tm and tk > 128:
            tk = max(128, tk // 2)
        elif tn >= tm and tn > 128:
            tn = max(128, tn // 2)
        else:
            tm = max(8, _round_up(tm // 2, 8))

    Mp, Kp, Np = _round_up(M, tm), _round_up(K, tk), _round_up(N, tn)

    # Cast (fuses with pad) and pad only up to the final tile multiples (usually just
    # the (8,128) alignment thanks to _choose_tile). Zero K-padding contributes nothing.
    xp = x.astype(in_dtype)
    wp = weight.astype(in_dtype)
    if Mp != M or Kp != K:
        xp = jnp.pad(xp, ((0, Mp - M), (0, Kp - K)))
    if Kp != K or Np != N:
        wp = jnp.pad(wp, ((0, Kp - K), (0, Np - N)))

    grid = (Mp // tm, Np // tn, Kp // tk)

    kernel = _matmul_kernel_scratch if use_scratch else _matmul_kernel_accout
    scratch_shapes = [pltpu.VMEM((tm, tn), jnp.float32)] if use_scratch else []

    cost = pl.CostEstimate(
        flops=2 * Mp * Np * Kp,
        bytes_accessed=(Mp * Kp + Kp * Np) * in_itemsize + Mp * Np * out_itemsize,
        transcendentals=0,
    )

    out = pl.pallas_call(
        kernel,
        out_shape=jax.ShapeDtypeStruct((Mp, Np), out_dtype),
        grid_spec=pltpu.PrefetchScalarGridSpec(
            num_scalar_prefetch=0,
            grid=grid,
            in_specs=[
                pl.BlockSpec((tm, tk), lambda i, j, k: (i, k)),
                pl.BlockSpec((tk, tn), lambda i, j, k: (k, j)),
            ],
            out_specs=pl.BlockSpec((tm, tn), lambda i, j, k: (i, j)),
            scratch_shapes=scratch_shapes,
        ),
        compiler_params=pltpu.CompilerParams(
            # M/N output tiles are independent -> parallel (megacore sharding);
            # K is the reduction carried in the resident accumulator -> arbitrary, last.
            dimension_semantics=("parallel", "parallel", "arbitrary"),
            vmem_limit_bytes=budget,
        ),
        cost_estimate=cost,
    )(xp, wp)

    if Mp != M or Np != N:
        out = out[:M, :N]
    return out


def _check(out, ref, tag, tol):
    assert out.shape == ref.shape, (tag, out.shape, ref.shape)
    err = jnp.max(jnp.abs(out.astype(jnp.float32) - ref.astype(jnp.float32)))
    rel = float(err) / (float(jnp.max(jnp.abs(ref))) + 1e-6)
    assert rel < tol, f"{tag}: relative error {rel} exceeds {tol}"


if __name__ == "__main__":
    key = jax.random.PRNGKey(0)
    k1, k2, k3, k4 = jax.random.split(key, 4)

    # Case 1: tiny shape from the original test (seq=8, hidden=32, out=16).
    # Exercises the pad-to-(8,128) single-block path.
    M, K, N = 8, 32, 16
    x_small = jax.random.normal(k1, (M, K), dtype=jnp.float32)
    w_small = jax.random.normal(k2, (K, N), dtype=jnp.float32)
    out_small = pallas_matmul(x_small, w_small)
    jax.block_until_ready(out_small)
    _check(out_small, x_small @ w_small, "small", tol=2e-2)

    # Case 2: tiled path — exercises K accumulation, megacore-parallel N tiles and the
    # bf16-operand / f32-accumulate path on a modest problem.
    M2, K2, N2 = 512, 1024, 512
    x_big = jax.random.normal(k3, (M2, K2), dtype=jnp.float32)
    w_big = jax.random.normal(k4, (K2, N2), dtype=jnp.float32)
    out_big = pallas_matmul(x_big, w_big)
    jax.block_until_ready(out_big)
    _check(out_big, x_big @ w_big, "tiled", tol=2e-2)

    print("KERNEL_OK")
</pallas_src>

<mosaic_0001>
module attributes {stable_mosaic.version = 11 : i64} {
  func.func @_matmul_kernel_accout(%arg0: i32, %arg1: i32, %arg2: i32, %arg3: memref<8x128xbf16, #tpu.memory_space<vmem>>, %arg4: memref<128x128xbf16, #tpu.memory_space<vmem>>, %arg5: memref<8x128xf32, #tpu.memory_space<vmem>>) attributes {dimension_semantics = [#tpu.dimension_semantics<parallel>, #tpu.dimension_semantics<parallel>, #tpu.dimension_semantics<arbitrary>], iteration_bounds = array<i64: 1, 1, 1>, scalar_prefetch = 0 : i64, scratch_operands = 0 : i64, tpu.core_type = #tpu.core_type<tc>, window_params = [{transform_indices = @transform_0, window_bounds = array<i64: 8, 128>}, {transform_indices = @transform_1, window_bounds = array<i64: 128, 128>}, {transform_indices = @transform_2, window_bounds = array<i64: 8, 128>}]} {
    %c0_i32 = arith.constant 0 : i32
    %0 = arith.cmpi eq, %arg2, %c0_i32 : i32
    %1 = arith.extui %0 : i1 to i32
    %c0_i32_0 = arith.constant 0 : i32
    %2 = arith.cmpi ne, %1, %c0_i32_0 : i32
    scf.if %2 {
      %cst_8 = arith.constant 0.000000e+00 : f32
      %9 = vector.broadcast %cst_8 : f32 to vector<8x128xf32>
      %c0_9 = arith.constant 0 : index
      %c0_10 = arith.constant 0 : index
      %10 = vector.load %arg5[%c0_9, %c0_10] : memref<8x128xf32, #tpu.memory_space<vmem>>, vector<8x128xf32>
      tpu.vector_store %arg5[%c0_9, %c0_10], %9 {strides = array<i32>} : memref<8x128xf32, #tpu.memory_space<vmem>>, vector<8x128xf32>,
    } else {
    }
    %c0 = arith.constant 0 : index
    %c0_1 = arith.constant 0 : index
    %3 = vector.load %arg5[%c0, %c0_1] : memref<8x128xf32, #tpu.memory_space<vmem>>, vector<8x128xf32>
    %c0_2 = arith.constant 0 : index
    %c0_3 = arith.constant 0 : index
    %4 = vector.load %arg3[%c0_2, %c0_3] : memref<8x128xbf16, #tpu.memory_space<vmem>>, vector<8x128xbf16>
    %c0_4 = arith.constant 0 : index
    %c0_5 = arith.constant 0 : index
    %5 = vector.load %arg4[%c0_4, %c0_5] : memref<128x128xbf16, #tpu.memory_space<vmem>>, vector<128x128xbf16>
    %cst = arith.constant dense<0.000000e+00> : vector<8x128xf32>
    %6 = tpu.matmul %4, %5, %cst {dimension_numbers = #tpu.dot_dimension_numbers<[1], [0], [0], [1], [0, 0, 1, 1], [], []>} : vector<8x128xbf16>, vector<128x128xbf16>, vector<8x128xf32> -> vector<8x128xf32>
    %7 = arith.addf %3, %6 : vector<8x128xf32>
    %c0_6 = arith.constant 0 : index
    %c0_7 = arith.constant 0 : index
    %8 = vector.load %arg5[%c0_6, %c0_7] : memref<8x128xf32, #tpu.memory_space<vmem>>, vector<8x128xf32>
    tpu.vector_store %arg5[%c0_6, %c0_7], %7 {strides = array<i32>} : memref<8x128xf32, #tpu.memory_space<vmem>>, vector<8x128xf32>,
    return
  }
  func.func @transform_0(%arg0: i32, %arg1: i32, %arg2: i32) -> (i32, i32) {
    %c0_i32 = arith.constant 0 : i32
    return %arg0, %arg2 : i32, i32
  }
  func.func @transform_1(%arg0: i32, %arg1: i32, %arg2: i32) -> (i32, i32) {
    %c0_i32 = arith.constant 0 : i32
    return %arg2, %arg1 : i32, i32
  }
  func.func @transform_2(%arg0: i32, %arg1: i32, %arg2: i32) -> (i32, i32) {
    %c0_i32 = arith.constant 0 : i32
    return %arg0, %arg1 : i32, i32
  }
}

</mosaic_0001>

<bundles_post_ra>
// kernel: tpu_custom_call.1
= control target key start
LH: loop header
LB: loop body
LE: loop exit
PB: predicated region body
PF: predicated region fallthrough
CT: control target
= control target key end

     0   :  { %7 = vsyncpa [#allocation3], 0  ;;  %s317_s0 = inlined_call_operand.hbm [shape: bf16[8,128], index: 0, kind: input, shape index: {}]   ;;  %s318_s1 = inlined_call_operand.hbm [shape: bf16[128,128], index: 1, kind: input, shape index: {}]   ;;  %s319_s2 = inlined_call_operand.hbm [shape: f32[8,128], index: 2, kind: output, shape index: {}]  }
   0x1   :  { %8 = vsyncpa [#allocation6], 0 }
   0x2   :  { %9 = vsyncpa [#allocation4], 0  ;;  %s286_s9 = smov [#allocation2]   ;;  %s287_s11 = smov [#allocation5]  }
   0x3   :  { %s16_s10 = sshll.u32 %s286_s9, 4  ;;  %s25_s12 = sshll.u32 %s287_s11, 4  ;;  %s17_s10 = int_to_ptr.vmem [resolvable:$true] %s16_s10  ;;  %s26_s12 = int_to_ptr.vmem [resolvable:$true] %s25_s12 }
   0x4   :  { %s228_s13 = scalar_lea.vmem %s17_s10, 64  ;;  %p233_p1 = scmp.lt.s32.totalorder %s17_s10, %s17_s10 }
   0x5   :  { %p229_p0 = scmp.ne.s32.totalorder %s17_s10, %s228_s13  ;;  %p234_p2 = scmp.lt.s32.totalorder %s228_s13, %s228_s13 }
   0x7   :  { %p235_p3 = por %p234_p2, %p233_p1 }
   0x9   :  { %p236_p4 = pnand %p235_p3, %p229_p0 }
   0xb   :  { %239 = shalt.err (!%p236_p4)
}
   0xc   :  { %19 = dma.hbm_to_vmem [thread:$0]  %s317_s0, 64, %s17_s10, [#allocation3]  }
   0xd   :  { %s248_s16 = scalar_lea.vmem %s26_s12, 1024  ;;  %p253_p6 = scmp.lt.s32.totalorder %s26_s12, %s26_s12 }
   0xe   :  { %p249_p5 = scmp.ne.s32.totalorder %s26_s12, %s248_s16  ;;  %p254_p7 = scmp.lt.s32.totalorder %s248_s16, %s248_s16 }
  0x10   :  { %p255_p8 = por %p254_p7, %p253_p6 }
  0x12   :  { %p256_p9 = pnand %p255_p8, %p249_p5 }
  0x14   :  { %259 = shalt.err (!%p256_p9)
}
  0x15   :  { %s288_s17 = smov 64   ;;  %s289_s18 = smov 4  }
  0x16   :  { %31 = dma.hbm_to_vmem [thread:$0]  %s318_s1, 1024, %s26_s12, [#allocation6], %s288_s17, %s288_s17, %s289_s18  }
  0x17   :  { %280 = dma.done.wait [#allocation3], 64  }
  0x18   :  { %281 = vsyncadd [#allocation3], 4294967232 }
  0x19   :  { %282 = dma.done.wait [#allocation6], 1024  }
  0x1a   :  { %283 = vsyncadd [#allocation6], 4294966272  ;;  %v290_v0 = vmov 0.0   ;;  %vm291_vm0 = vmmov 0   ;;  %v212_v1 = vld [vmem:[#allocation5 + $0x38] sm:$0xff]   ;;  %v213_v2 = vld [vmem:[#allocation5 + $0x30] sm:$0xff]  }
  0x1b   :  { %185 = vmatprep.subr.bf16.mxu0 %v290_v0  ;;  %201 = vmatprep.mubr.msk.bf16.mxu0 %vm291_vm0, %v290_v0  ;;  %v214_v3 = vld [vmem:[#allocation5 + $0x28] sm:$0xff]   ;;  %v215_v4 = vld [vmem:[#allocation5 + $0x20] sm:$0xff]   ;;  %v216_v5 = vld [vmem:[#allocation5 + $0x18] sm:$0xff]   ;;  %s292_s0 = smov [#allocation7]  }
  0x1c   :  { %186 = vmatpush3.bf16.msra.mxu0 %v212_v1  ;;  %v217_v6 = vld [vmem:[#allocation5 + $0x10] sm:$0xff]   ;;  %v218_v7 = vld [vmem:[#allocation5 + $0x8] sm:$0xff]   ;;  %v219_v8 = vld [vmem:[#allocation5] sm:$0xff]   ;;  %s158_s1 = sshll.u32 %s292_s0, 4  ;;  %s159_s1 = int_to_ptr.vmem [resolvable:$true] %s158_s1 }
  0x1d   :  { %187 = vmatprep.subr.bf16.mxu0 %v290_v0  ;;  %v45_v9 = vld [vmem:[#allocation2] sm:$0xf]  ;;  %s260_s21 = scalar_lea.vmem %s159_s1, 128  ;;  %p265_p11 = scmp.lt.s32.totalorder %s159_s1, %s159_s1 }
  0x1e   :  { %p261_p10 = scmp.ne.s32.totalorder %s159_s1, %s260_s21  ;;  %p266_p12 = scmp.lt.s32.totalorder %s260_s21, %s260_s21 }
  0x20   :  { %188 = vmatpush3.bf16.msra.mxu0 %v213_v2  ;;  %p267_p13 = por %p266_p12, %p265_p11 }
  0x21   :  { %189 = vmatprep.subr.bf16.mxu0 %v290_v0 }
  0x22   :  { %p268_p0 = pnand %p267_p13, %p261_p10 }
  0x24   :  { %190 = vmatpush3.bf16.msra.mxu0 %v214_v3 }
  0x25   :  { %191 = vmatprep.subr.bf16.mxu0 %v290_v0 }
  0x28   :  { %192 = vmatpush3.bf16.msra.mxu0 %v215_v4 }
  0x29   :  { %193 = vmatprep.subr.bf16.mxu0 %v290_v0 }
  0x2c   :  { %194 = vmatpush3.bf16.msra.mxu0 %v216_v5 }
  0x2d   :  { %195 = vmatprep.subr.bf16.mxu0 %v290_v0 }
  0x30   :  { %196 = vmatpush3.bf16.msra.mxu0 %v217_v6 }
  0x31   :  { %197 = vmatprep.subr.bf16.mxu0 %v290_v0 }
  0x34   :  { %198 = vmatpush3.bf16.msra.mxu0 %v218_v7 }
  0x35   :  { %199 = vmatprep.subr.bf16.mxu0 %v290_v0 }
  0x38   :  { %200 = vmatpush3.bf16.msra.mxu0 %v219_v8 }
  0x3b   :  { %202 = vmatmul.mubr.bf16.vlgmr.msra.gmra.mxu0 %v45_v9 }
  0xfb   :  { %v144_v10 = vpop.f32.mrf.mxu0 }
  0xfc   :  { %151 = vst [vmem:[#allocation7] sm:$0xff] %v144_v10 }
  0xfd   :  { %v203_v11 = vpop.f32.mrf.mxu0 }
  0xff   :  { %v147_v12 = vpop.f32.mrf.mxu0 }
 0x100   :  { %271 = shalt.err (!%p268_p0)
}
 0x101   :  { %161 = dma.vmem_to_hbm [thread:$0]  %s159_s1, 128, %s319_s2, [#allocation4]   ;;  %v204_v13 = vpop.f32.mrf.mxu0 }
 0x102   :  { %284 = dma.done.wait [#allocation4], 128  }
 0x103   :  { %285 = vsyncadd [#allocation4], 4294967168 }
 0x104   :  { %165 = vsyncpa [#allocation3], 1 }
 0x105   :  { %166 = vsyncpa [#allocation6], 1 }
 0x106   :  { %167 = vsyncpa [#allocation4], 1 }

</bundles_post_ra>
